<compile_context>
chip_gen: v6e
topology: v6e:2x2x1
jax: 0.10.0
libtpu: 0.0.40
codegen_flags: <defaults>
</compile_context>

<pallas_src>
import jax
import jax.numpy as jnp
from jax import lax
from jax.experimental import pallas as pl
from jax.experimental.pallas import tpu as pltpu


def _round_up(x: int, n: int) -> int:
    return ((x + n - 1) // n) * n


def _make_kernel(num_layers: int, input_dim: int):
    """Gated-MLP forward + analytic VJP wrt z, for one batch tile."""

    def kernel(h0_ref, e_ref, m_ref, WT_ref, W_ref, vec_ref, out_ref):
        h = h0_ref[...]            # (TB, D)  pad(concat([z, cond]))
        e = e_ref[...]             # (TB, D)  Hutchinson probe, zero-padded
        m = m_ref[...]             # (TB, 1)  mask (broadcasts on VPU)
        WT = WT_ref[...]           # (L, D, D) per-layer W^T (Din, Dout), padded
        W = W_ref[...]             # (L, D, D) per-layer W   (Dout, Din), padded
        vec = vec_ref[...]         # (L, 3, D) [bias b, gate g, shift c]

        ds = []                    # backward multipliers per layer
        # ---------------- forward: ODENet (stack of Gated_Linear) -----------
        for l in range(num_layers):
            b = vec[l, 0][None, :]
            g = vec[l, 1][None, :]
            c = vec[l, 2][None, :]
            a = jnp.dot(h, WT[l], preferred_element_type=jnp.float32)
            pre = (a + b) * g + c
            if l < num_layers - 1:
                # fused, numerically-stable softplus + sigmoid (its derivative)
                enabs = jnp.exp(-jnp.abs(pre))
                inv = 1.0 / (1.0 + enabs)
                sig = jnp.where(pre >= 0.0, inv, 1.0 - inv)
                h = jnp.maximum(pre, 0.0) + jnp.log1p(enabs)   # softplus(pre)
                ds.append(g * sig)
            else:
                h = pre
                ds.append(g)
        dz = h * m                 # zero beyond input_dim by weight padding

        # ------------- backward: e^T d(dz)/dz  (manual VJP) -----------------
        v = e * m
        for l in reversed(range(num_layers)):
            v = v * ds[l]
            v = jnp.dot(v, W[l], preferred_element_type=jnp.float32)
        # v = grad wrt concat([z, cond]); z occupies the first input_dim lanes.
        # e is zero beyond input_dim, so the divergence needs no extra mask.
        div = jnp.sum(v * e, axis=1, keepdims=True)                  # (TB, 1)

        col = lax.broadcasted_iota(jnp.int32, dz.shape, 1)
        vz = jnp.where(col < input_dim, v, 0.0)
        sqn = jnp.sum(vz * vz, axis=1, keepdims=True) * (1.0 / float(input_dim))

        # single lane-dense output block: [dz | div | sqn | 0 ...]
        out = jnp.where(col < input_dim, dz, 0.0)
        out = jnp.where(col == input_dim, div, out)
        out = jnp.where(col == input_dim + 1, sqn, out)
        out_ref[...] = out

    return kernel


def regularized_odefunc_forward(params, s_scalar, x, logp, cond, m, e,
                                *, hidden_dim):
    """Mirrors RegularizedODEfunc.forward(s, (x, logp, cond, m))."""
    B, input_dim = x.shape
    cond_dim = cond.shape[1]
    L = len(params)
    f32 = jnp.float32

    # lane-dense feature axis; room for dz + div + sqn in one output block
    Dmax = _round_up(max(hidden_dim, input_dim + cond_dim, input_dim + 2), 128)
    if B >= 512:
        TB = 512
    elif B >= 256:
        TB = 256
    else:
        TB = _round_up(B, 8)
    Bp = _round_up(B, TB)

    # ---- glue: pack/pad params; hoist scalar-s gate math to the host --------
    W_all = jnp.zeros((L, Dmax, Dmax), f32)
    vec_all = jnp.zeros((L, 3, Dmax), f32)     # rows: bias b, gate g, shift c
    for l, (W, b, wg, bg, wb) in enumerate(params):
        dout, din = W.shape
        W_all = W_all.at[l, :dout, :din].set(W.astype(f32))
        g = jax.nn.sigmoid(s_scalar * wg[:, 0] + bg).astype(f32)   # gate(s)
        c = (s_scalar * wb[:, 0]).astype(f32)                      # bias(s)
        vec_all = vec_all.at[l, 0, :dout].set(b.astype(f32))
        vec_all = vec_all.at[l, 1, :dout].set(g)
        vec_all = vec_all.at[l, 2, :dout].set(c)
    WT_all = jnp.transpose(W_all, (0, 2, 1))   # (L, Din, Dout) for forward dot

    h0 = jnp.zeros((Bp, Dmax), f32).at[:B, :input_dim + cond_dim].set(
        jnp.concatenate([x, cond], axis=1).astype(f32))
    e_pad = jnp.zeros((Bp, Dmax), f32).at[:B, :input_dim].set(e.astype(f32))
    m_pad = jnp.zeros((Bp, 1), f32).at[:B, :].set(m.astype(f32))

    kernel = _make_kernel(L, input_dim)
    batch_spec = pl.BlockSpec((TB, Dmax), lambda i: (i, 0))
    const3 = lambda i: (0, 0, 0)

    out = pl.pallas_call(
        kernel,
        out_shape=jax.ShapeDtypeStruct((Bp, Dmax), f32),
        grid=(Bp // TB,),
        in_specs=[
            batch_spec,                                        # h0
            batch_spec,                                        # e
            pl.BlockSpec((TB, 1), lambda i: (i, 0)),           # m
            pl.BlockSpec((L, Dmax, Dmax), const3),             # W^T (resident)
            pl.BlockSpec((L, Dmax, Dmax), const3),             # W   (resident)
            pl.BlockSpec((L, 3, Dmax), const3),                # packed vectors
        ],
        out_specs=pl.BlockSpec((TB, Dmax), lambda i: (i, 0)),
        compiler_params=pltpu.CompilerParams(
            dimension_semantics=("parallel",)),
    )(h0, e_pad, m_pad, WT_all, W_all, vec_all)

    dz = out[:B, :input_dim]
    divergence = out[:B, input_dim:input_dim + 1]       # (B, 1)
    sqjacnorm = out[:B, input_dim + 1]                  # self.sqjacnorm

    # ODEFunc returns (dz, -div, zeros_like(cond), zeros_like(m));
    # RegularizedODEfunc with len(state)==4 forwards that tuple unchanged.
    ret = (dz, -divergence, jnp.zeros_like(cond), jnp.zeros_like(m))
    # TODO(synk): the len(state)>4 branch calls arbitrary reg_fn callables;
    # not translatable generically, so the reg_fns=() path is implemented.
    return ret, sqjacnorm


def _reference(params, s_scalar, x, cond, m, e):
    """Pure-JAX reference using jax.vjp in place of torch.autograd.grad."""
    B = x.shape[0]
    sb = jnp.full((B, 1), s_scalar, jnp.float32)
    L = len(params)

    def odenet(z):
        h = jnp.concatenate([z, cond], axis=1)
        for l, (W, b, wg, bg, wb) in enumerate(params):
            a = h @ W.T + b
            g = jax.nn.sigmoid(sb @ wg.T + bg)
            c = sb @ wb.T
            h = a * g + c
            if l < L - 1:
                h = jax.nn.softplus(h)
        return h * m

    dz, vjp_fn = jax.vjp(odenet, x)
    (e_dzdx,) = vjp_fn(e)
    div = jnp.sum(e_dzdx * e, axis=1, keepdims=True)
    sqn = jnp.mean(e_dzdx ** 2, axis=1, keepdims=True)
    return dz, div, sqn


if __name__ == "__main__":
    B, input_dim, cond_dim, hidden_dim, hidden_layer = 8, 4, 4, 32, 2
    num_layers = hidden_layer + 2
    dims_in = [input_dim + cond_dim] + [hidden_dim] * (hidden_layer + 1)
    dims_out = [hidden_dim] * (hidden_layer + 1) + [input_dim]

    key = jax.random.PRNGKey(0)
    params = []
    for l in range(num_layers):
        key, k1, k2, k3, k4, k5 = jax.random.split(key, 6)
        din, dout = dims_in[l], dims_out[l]
        bw = 1.0 / (din ** 0.5)
        W = jax.random.uniform(k1, (dout, din), jnp.float32, -bw, bw)
        b = jax.random.uniform(k2, (dout,), jnp.float32, -bw, bw)
        wg = jax.random.uniform(k3, (dout, 1), jnp.float32, -1.0, 1.0)
        bg = jax.random.uniform(k4, (dout,), jnp.float32, -1.0, 1.0)
        wb = jax.random.uniform(k5, (dout, 1), jnp.float32, -1.0, 1.0)
        params.append((W, b, wg, bg, wb))

    key, kx, kc, km, ke = jax.random.split(key, 5)
    x = jax.random.normal(kx, (B, input_dim), jnp.float32)
    logp = jnp.zeros((B, 1), jnp.float32)
    cond = jax.random.normal(kc, (B, cond_dim), jnp.float32)
    m = (jax.random.uniform(km, (B, 1)) > 0.3).astype(jnp.float32)
    e = jax.random.normal(ke, (B, input_dim), jnp.float32)  # ODEFunc._e (1 sample)
    s = 0.5

    (dz, neg_div, dcond, dm), sqjacnorm = regularized_odefunc_forward(
        params, s, x, logp, cond, m, e, hidden_dim=hidden_dim)
    jax.block_until_ready(dz)

    dz_r, div_r, sqn_r = _reference(params, s, x, cond, m, e)
    assert dz.shape == (B, input_dim) and neg_div.shape == (B, 1)
    assert dcond.shape == cond.shape and dm.shape == m.shape
    assert jnp.allclose(dz, dz_r, atol=1e-4, rtol=1e-4)
    assert jnp.allclose(neg_div, -div_r, atol=1e-4, rtol=1e-4)
    assert jnp.allclose(sqjacnorm, sqn_r[:, 0], atol=1e-4, rtol=1e-4)
    print("KERNEL_OK")
</pallas_src>

<mosaic_0001>
module attributes {stable_mosaic.version = 11 : i64} {
  func.func @kernel(%arg0: i32, %arg1: memref<8x128xf32, #tpu.memory_space<vmem>>, %arg2: memref<8x128xf32, #tpu.memory_space<vmem>>, %arg3: memref<8x1xf32, #tpu.memory_space<vmem>>, %arg4: memref<4x128x128xf32, #tpu.memory_space<vmem>>, %arg5: memref<4x128x128xf32, #tpu.memory_space<vmem>>, %arg6: memref<4x3x128xf32, #tpu.memory_space<vmem>>, %arg7: memref<8x128xf32, #tpu.memory_space<vmem>>) attributes {dimension_semantics = [#tpu.dimension_semantics<parallel>], iteration_bounds = array<i64: 1>, scalar_prefetch = 0 : i64, scratch_operands = 0 : i64, tpu.core_type = #tpu.core_type<tc>, window_params = [{transform_indices = @transform_0, window_bounds = array<i64: 8, 128>}, {transform_indices = @transform_1, window_bounds = array<i64: 8, 128>}, {transform_indices = @transform_2, window_bounds = array<i64: 8, 1>}, {pipeline_mode = #tpu.pipeline_mode<synchronous>, transform_indices = @transform_3, window_bounds = array<i64: 4, 128, 128>}, {pipeline_mode = #tpu.pipeline_mode<synchronous>, transform_indices = @transform_4, window_bounds = array<i64: 4, 128, 128>}, {pipeline_mode = #tpu.pipeline_mode<synchronous>, transform_indices = @transform_5, window_bounds = array<i64: 4, 3, 128>}, {transform_indices = @transform_6, window_bounds = array<i64: 8, 128>}]} {
    %c0 = arith.constant 0 : index
    %c0_0 = arith.constant 0 : index
    %0 = vector.load %arg1[%c0, %c0_0] : memref<8x128xf32, #tpu.memory_space<vmem>>, vector<8x128xf32>
    %c0_1 = arith.constant 0 : index
    %c0_2 = arith.constant 0 : index
    %1 = vector.load %arg2[%c0_1, %c0_2] : memref<8x128xf32, #tpu.memory_space<vmem>>, vector<8x128xf32>
    %c0_3 = arith.constant 0 : index
    %c0_4 = arith.constant 0 : index
    %2 = vector.load %arg3[%c0_3, %c0_4] : memref<8x1xf32, #tpu.memory_space<vmem>>, vector<8x1xf32>
    %c0_5 = arith.constant 0 : index
    %c0_6 = arith.constant 0 : index
    %c0_7 = arith.constant 0 : index
    %3 = vector.load %arg4[%c0_5, %c0_6, %c0_7] : memref<4x128x128xf32, #tpu.memory_space<vmem>>, vector<4x128x128xf32>
    %c0_8 = arith.constant 0 : index
    %c0_9 = arith.constant 0 : index
    %c0_10 = arith.constant 0 : index
    %4 = vector.load %arg5[%c0_8, %c0_9, %c0_10] : memref<4x128x128xf32, #tpu.memory_space<vmem>>, vector<4x128x128xf32>
    %c0_11 = arith.constant 0 : index
    %c0_12 = arith.constant 0 : index
    %c0_13 = arith.constant 0 : index
    %5 = vector.load %arg6[%c0_11, %c0_12, %c0_13] : memref<4x3x128xf32, #tpu.memory_space<vmem>>, vector<4x3x128xf32>
    %6 = vector.extract_strided_slice %5 {offsets = [0, 0, 0], sizes = [1, 1, 128], strides = [1, 1, 1]} : vector<4x3x128xf32> to vector<1x1x128xf32>
    %7 = vector.shape_cast %6 : vector<1x1x128xf32> to vector<128xf32>
    %8 = vector.shape_cast %7 : vector<128xf32> to vector<1x128xf32>
    %9 = vector.extract_strided_slice %5 {offsets = [0, 1, 0], sizes = [1, 1, 128], strides = [1, 1, 1]} : vector<4x3x128xf32> to vector<1x1x128xf32>
    %10 = vector.shape_cast %9 : vector<1x1x128xf32> to vector<128xf32>
    %11 = vector.shape_cast %10 : vector<128xf32> to vector<1x128xf32>
    %12 = vector.extract_strided_slice %5 {offsets = [0, 2, 0], sizes = [1, 1, 128], strides = [1, 1, 1]} : vector<4x3x128xf32> to vector<1x1x128xf32>
    %13 = vector.shape_cast %12 : vector<1x1x128xf32> to vector<128xf32>
    %14 = vector.shape_cast %13 : vector<128xf32> to vector<1x128xf32>
    %15 = vector.extract_strided_slice %3 {offsets = [0, 0, 0], sizes = [1, 128, 128], strides = [1, 1, 1]} : vector<4x128x128xf32> to vector<1x128x128xf32>
    %16 = vector.shape_cast %15 : vector<1x128x128xf32> to vector<128x128xf32>
    %cst = arith.constant dense<0.000000e+00> : vector<8x128xf32>
    %17 = tpu.matmul %0, %16, %cst {dimension_numbers = #tpu.dot_dimension_numbers<[1], [0], [0], [1], [0, 0, 1, 1], [], []>} : vector<8x128xf32>, vector<128x128xf32>, vector<8x128xf32> -> vector<8x128xf32>
    %18 = vector.broadcast %8 : vector<1x128xf32> to vector<8x128xf32>
    %19 = arith.addf %17, %18 : vector<8x128xf32>
    %20 = vector.broadcast %11 : vector<1x128xf32> to vector<8x128xf32>
    %21 = arith.mulf %19, %20 : vector<8x128xf32>
    %22 = vector.broadcast %14 : vector<1x128xf32> to vector<8x128xf32>
    %23 = arith.addf %21, %22 : vector<8x128xf32>
    %24 = math.absf %23 : vector<8x128xf32>
    %cst_14 = arith.constant 0.000000e+00 : f32
    %25 = vector.broadcast %cst_14 : f32 to vector<8x128xf32>
    %26 = arith.subf %25, %24 : vector<8x128xf32>
    %27 = math.exp %26 : vector<8x128xf32>
    %cst_15 = arith.constant 1.000000e+00 : f32
    %28 = vector.broadcast %cst_15 : f32 to vector<8x128xf32>
    %29 = arith.addf %28, %27 : vector<8x128xf32>
    %cst_16 = arith.constant 1.000000e+00 : f32
    %30 = vector.broadcast %cst_16 : f32 to vector<8x128xf32>
    %31 = arith.divf %30, %29 : vector<8x128xf32>
    %cst_17 = arith.constant 0.000000e+00 : f32
    %32 = vector.broadcast %cst_17 : f32 to vector<8x128xf32>
    %33 = arith.cmpf oge, %23, %32 : vector<8x128xf32>
    %cst_18 = arith.constant 1.000000e+00 : f32
    %34 = vector.broadcast %cst_18 : f32 to vector<8x128xf32>
    %35 = arith.subf %34, %31 : vector<8x128xf32>
    %36 = arith.select %33, %31, %35 : vector<8x128xi1>, vector<8x128xf32>
    %cst_19 = arith.constant 0.000000e+00 : f32
    %37 = vector.broadcast %cst_19 : f32 to vector<8x128xf32>
    %38 = arith.maximumf %23, %37 : vector<8x128xf32>
    %39 = math.log1p %27 : vector<8x128xf32>
    %40 = arith.addf %38, %39 : vector<8x128xf32>
    %41 = vector.broadcast %11 : vector<1x128xf32> to vector<8x128xf32>
    %42 = arith.mulf %41, %36 : vector<8x128xf32>
    %43 = vector.extract_strided_slice %5 {offsets = [1, 0, 0], sizes = [1, 1, 128], strides = [1, 1, 1]} : vector<4x3x128xf32> to vector<1x1x128xf32>
    %44 = vector.shape_cast %43 : vector<1x1x128xf32> to vector<128xf32>
    %45 = vector.shape_cast %44 : vector<128xf32> to vector<1x128xf32>
    %46 = vector.extract_strided_slice %5 {offsets = [1, 1, 0], sizes = [1, 1, 128], strides = [1, 1, 1]} : vector<4x3x128xf32> to vector<1x1x128xf32>
    %47 = vector.shape_cast %46 : vector<1x1x128xf32> to vector<128xf32>
    %48 = vector.shape_cast %47 : vector<128xf32> to vector<1x128xf32>
    %49 = vector.extract_strided_slice %5 {offsets = [1, 2, 0], sizes = [1, 1, 128], strides = [1, 1, 1]} : vector<4x3x128xf32> to vector<1x1x128xf32>
    %50 = vector.shape_cast %49 : vector<1x1x128xf32> to vector<128xf32>
    %51 = vector.shape_cast %50 : vector<128xf32> to vector<1x128xf32>
    %52 = vector.extract_strided_slice %3 {offsets = [1, 0, 0], sizes = [1, 128, 128], strides = [1, 1, 1]} : vector<4x128x128xf32> to vector<1x128x128xf32>
    %53 = vector.shape_cast %52 : vector<1x128x128xf32> to vector<128x128xf32>
    %cst_20 = arith.constant dense<0.000000e+00> : vector<8x128xf32>
    %54 = tpu.matmul %40, %53, %cst_20 {dimension_numbers = #tpu.dot_dimension_numbers<[1], [0], [0], [1], [0, 0, 1, 1], [], []>} : vector<8x128xf32>, vector<128x128xf32>, vector<8x128xf32> -> vector<8x128xf32>
    %55 = vector.broadcast %45 : vector<1x128xf32> to vector<8x128xf32>
    %56 = arith.addf %54, %55 : vector<8x128xf32>
    %57 = vector.broadcast %48 : vector<1x128xf32> to vector<8x128xf32>
    %58 = arith.mulf %56, %57 : vector<8x128xf32>
    %59 = vector.broadcast %51 : vector<1x128xf32> to vector<8x128xf32>
    %60 = arith.addf %58, %59 : vector<8x128xf32>
    %61 = math.absf %60 : vector<8x128xf32>
    %cst_21 = arith.constant 0.000000e+00 : f32
    %62 = vector.broadcast %cst_21 : f32 to vector<8x128xf32>
    %63 = arith.subf %62, %61 : vector<8x128xf32>
    %64 = math.exp %63 : vector<8x128xf32>
    %cst_22 = arith.constant 1.000000e+00 : f32
    %65 = vector.broadcast %cst_22 : f32 to vector<8x128xf32>
    %66 = arith.addf %65, %64 : vector<8x128xf32>
    %cst_23 = arith.constant 1.000000e+00 : f32
    %67 = vector.broadcast %cst_23 : f32 to vector<8x128xf32>
    %68 = arith.divf %67, %66 : vector<8x128xf32>
    %cst_24 = arith.constant 0.000000e+00 : f32
    %69 = vector.broadcast %cst_24 : f32 to vector<8x128xf32>
    %70 = arith.cmpf oge, %60, %69 : vector<8x128xf32>
    %cst_25 = arith.constant 1.000000e+00 : f32
    %71 = vector.broadcast %cst_25 : f32 to vector<8x128xf32>
    %72 = arith.subf %71, %68 : vector<8x128xf32>
    %73 = arith.select %70, %68, %72 : vector<8x128xi1>, vector<8x128xf32>
    %cst_26 = arith.constant 0.000000e+00 : f32
    %74 = vector.broadcast %cst_26 : f32 to vector<8x128xf32>
    %75 = arith.maximumf %60, %74 : vector<8x128xf32>
    %76 = math.log1p %64 : vector<8x128xf32>
    %77 = arith.addf %75, %76 : vector<8x128xf32>
    %78 = vector.broadcast %48 : vector<1x128xf32> to vector<8x128xf32>
    %79 = arith.mulf %78, %73 : vector<8x128xf32>
    %80 = vector.extract_strided_slice %5 {offsets = [2, 0, 0], sizes = [1, 1, 128], strides = [1, 1, 1]} : vector<4x3x128xf32> to vector<1x1x128xf32>
    %81 = vector.shape_cast %80 : vector<1x1x128xf32> to vector<128xf32>
    %82 = vector.shape_cast %81 : vector<128xf32> to vector<1x128xf32>
    %83 = vector.extract_strided_slice %5 {offsets = [2, 1, 0], sizes = [1, 1, 128], strides = [1, 1, 1]} : vector<4x3x128xf32> to vector<1x1x128xf32>
    %84 = vector.shape_cast %83 : vector<1x1x128xf32> to vector<128xf32>
    %85 = vector.shape_cast %84 : vector<128xf32> to vector<1x128xf32>
    %86 = vector.extract_strided_slice %5 {offsets = [2, 2, 0], sizes = [1, 1, 128], strides = [1, 1, 1]} : vector<4x3x128xf32> to vector<1x1x128xf32>
    %87 = vector.shape_cast %86 : vector<1x1x128xf32> to vector<128xf32>
    %88 = vector.shape_cast %87 : vector<128xf32> to vector<1x128xf32>
    %89 = vector.extract_strided_slice %3 {offsets = [2, 0, 0], sizes = [1, 128, 128], strides = [1, 1, 1]} : vector<4x128x128xf32> to vector<1x128x128xf32>
    %90 = vector.shape_cast %89 : vector<1x128x128xf32> to vector<128x128xf32>
    %cst_27 = arith.constant dense<0.000000e+00> : vector<8x128xf32>
    %91 = tpu.matmul %77, %90, %cst_27 {dimension_numbers = #tpu.dot_dimension_numbers<[1], [0], [0], [1], [0, 0, 1, 1], [], []>} : vector<8x128xf32>, vector<128x128xf32>, vector<8x128xf32> -> vector<8x128xf32>
    %92 = vector.broadcast %82 : vector<1x128xf32> to vector<8x128xf32>
    %93 = arith.addf %91, %92 : vector<8x128xf32>
    %94 = vector.broadcast %85 : vector<1x128xf32> to vector<8x128xf32>
    %95 = arith.mulf %93, %94 : vector<8x128xf32>
    %96 = vector.broadcast %88 : vector<1x128xf32> to vector<8x128xf32>
    %97 = arith.addf %95, %96 : vector<8x128xf32>
    %98 = math.absf %97 : vector<8x128xf32>
    %cst_28 = arith.constant 0.000000e+00 : f32
    %99 = vector.broadcast %cst_28 : f32 to vector<8x128xf32>
    %100 = arith.subf %99, %98 : vector<8x128xf32>
    %101 = math.exp %100 : vector<8x128xf32>
    %cst_29 = arith.constant 1.000000e+00 : f32
    %102 = vector.broadcast %cst_29 : f32 to vector<8x128xf32>
    %103 = arith.addf %102, %101 : vector<8x128xf32>
    %cst_30 = arith.constant 1.000000e+00 : f32
    %104 = vector.broadcast %cst_30 : f32 to vector<8x128xf32>
    %105 = arith.divf %104, %103 : vector<8x128xf32>
    %cst_31 = arith.constant 0.000000e+00 : f32
    %106 = vector.broadcast %cst_31 : f32 to vector<8x128xf32>
    %107 = arith.cmpf oge, %97, %106 : vector<8x128xf32>
    %cst_32 = arith.constant 1.000000e+00 : f32
    %108 = vector.broadcast %cst_32 : f32 to vector<8x128xf32>
    %109 = arith.subf %108, %105 : vector<8x128xf32>
    %110 = arith.select %107, %105, %109 : vector<8x128xi1>, vector<8x128xf32>
    %cst_33 = arith.constant 0.000000e+00 : f32
    %111 = vector.broadcast %cst_33 : f32 to vector<8x128xf32>
    %112 = arith.maximumf %97, %111 : vector<8x128xf32>
    %113 = math.log1p %101 : vector<8x128xf32>
    %114 = arith.addf %112, %113 : vector<8x128xf32>
    %115 = vector.broadcast %85 : vector<1x128xf32> to vector<8x128xf32>
    %116 = arith.mulf %115, %110 : vector<8x128xf32>
    %117 = vector.extract_strided_slice %5 {offsets = [3, 0, 0], sizes = [1, 1, 128], strides = [1, 1, 1]} : vector<4x3x128xf32> to vector<1x1x128xf32>
    %118 = vector.shape_cast %117 : vector<1x1x128xf32> to vector<128xf32>
    %119 = vector.shape_cast %118 : vector<128xf32> to vector<1x128xf32>
    %120 = vector.extract_strided_slice %5 {offsets = [3, 1, 0], sizes = [1, 1, 128], strides = [1, 1, 1]} : vector<4x3x128xf32> to vector<1x1x128xf32>
    %121 = vector.shape_cast %120 : vector<1x1x128xf32> to vector<128xf32>
    %122 = vector.shape_cast %121 : vector<128xf32> to vector<1x128xf32>
    %123 = vector.extract_strided_slice %5 {offsets = [3, 2, 0], sizes = [1, 1, 128], strides = [1, 1, 1]} : vector<4x3x128xf32> to vector<1x1x128xf32>
    %124 = vector.shape_cast %123 : vector<1x1x128xf32> to vector<128xf32>
    %125 = vector.shape_cast %124 : vector<128xf32> to vector<1x128xf32>
    %126 = vector.extract_strided_slice %3 {offsets = [3, 0, 0], sizes = [1, 128, 128], strides = [1, 1, 1]} : vector<4x128x128xf32> to vector<1x128x128xf32>
    %127 = vector.shape_cast %126 : vector<1x128x128xf32> to vector<128x128xf32>
    %cst_34 = arith.constant dense<0.000000e+00> : vector<8x128xf32>
    %128 = tpu.matmul %114, %127, %cst_34 {dimension_numbers = #tpu.dot_dimension_numbers<[1], [0], [0], [1], [0, 0, 1, 1], [], []>} : vector<8x128xf32>, vector<128x128xf32>, vector<8x128xf32> -> vector<8x128xf32>
    %129 = vector.broadcast %119 : vector<1x128xf32> to vector<8x128xf32>
    %130 = arith.addf %128, %129 : vector<8x128xf32>
    %131 = vector.broadcast %122 : vector<1x128xf32> to vector<8x128xf32>
    %132 = arith.mulf %130, %131 : vector<8x128xf32>
    %133 = vector.broadcast %125 : vector<1x128xf32> to vector<8x128xf32>
    %134 = arith.addf %132, %133 : vector<8x128xf32>
    %135 = vector.broadcast %2 : vector<8x1xf32> to vector<8x128xf32>
    %136 = arith.mulf %134, %135 : vector<8x128xf32>
    %137 = vector.broadcast %2 : vector<8x1xf32> to vector<8x128xf32>
    %138 = arith.mulf %1, %137 : vector<8x128xf32>
    %139 = vector.broadcast %122 : vector<1x128xf32> to vector<8x128xf32>
    %140 = arith.mulf %138, %139 : vector<8x128xf32>
    %141 = vector.extract_strided_slice %4 {offsets = [3, 0, 0], sizes = [1, 128, 128], strides = [1, 1, 1]} : vector<4x128x128xf32> to vector<1x128x128xf32>
    %142 = vector.shape_cast %141 : vector<1x128x128xf32> to vector<128x128xf32>
    %cst_35 = arith.constant dense<0.000000e+00> : vector<8x128xf32>
    %143 = tpu.matmul %140, %142, %cst_35 {dimension_numbers = #tpu.dot_dimension_numbers<[1], [0], [0], [1], [0, 0, 1, 1], [], []>} : vector<8x128xf32>, vector<128x128xf32>, vector<8x128xf32> -> vector<8x128xf32>
    %144 = arith.mulf %143, %116 : vector<8x128xf32>
    %145 = vector.extract_strided_slice %4 {offsets = [2, 0, 0], sizes = [1, 128, 128], strides = [1, 1, 1]} : vector<4x128x128xf32> to vector<1x128x128xf32>
    %146 = vector.shape_cast %145 : vector<1x128x128xf32> to vector<128x128xf32>
    %cst_36 = arith.constant dense<0.000000e+00> : vector<8x128xf32>
    %147 = tpu.matmul %144, %146, %cst_36 {dimension_numbers = #tpu.dot_dimension_numbers<[1], [0], [0], [1], [0, 0, 1, 1], [], []>} : vector<8x128xf32>, vector<128x128xf32>, vector<8x128xf32> -> vector<8x128xf32>
    %148 = arith.mulf %147, %79 : vector<8x128xf32>
    %149 = vector.extract_strided_slice %4 {offsets = [1, 0, 0], sizes = [1, 128, 128], strides = [1, 1, 1]} : vector<4x128x128xf32> to vector<1x128x128xf32>
    %150 = vector.shape_cast %149 : vector<1x128x128xf32> to vector<128x128xf32>
    %cst_37 = arith.constant dense<0.000000e+00> : vector<8x128xf32>
    %151 = tpu.matmul %148, %150, %cst_37 {dimension_numbers = #tpu.dot_dimension_numbers<[1], [0], [0], [1], [0, 0, 1, 1], [], []>} : vector<8x128xf32>, vector<128x128xf32>, vector<8x128xf32> -> vector<8x128xf32>
    %152 = arith.mulf %151, %42 : vector<8x128xf32>
    %153 = vector.extract_strided_slice %4 {offsets = [0, 0, 0], sizes = [1, 128, 128], strides = [1, 1, 1]} : vector<4x128x128xf32> to vector<1x128x128xf32>
    %154 = vector.shape_cast %153 : vector<1x128x128xf32> to vector<128x128xf32>
    %cst_38 = arith.constant dense<0.000000e+00> : vector<8x128xf32>
    %155 = tpu.matmul %152, %154, %cst_38 {dimension_numbers = #tpu.dot_dimension_numbers<[1], [0], [0], [1], [0, 0, 1, 1], [], []>} : vector<8x128xf32>, vector<128x128xf32>, vector<8x128xf32> -> vector<8x128xf32>
    %156 = arith.mulf %155, %1 : vector<8x128xf32>
    %cst_39 = arith.constant dense<0.000000e+00> : vector<8xf32>
    %157 = vector.multi_reduction <add>, %156, %cst_39 [1] : vector<8x128xf32> to vector<8xf32>
    %158 = vector.shape_cast %157 : vector<8xf32> to vector<8x1xf32>
    %159 = tpu.iota {dimensions = array<i32: 1>} : vector<8x128xi32>
    %c4_i32 = arith.constant 4 : i32
    %160 = vector.broadcast %c4_i32 : i32 to vector<8x128xi32>
    %161 = arith.cmpi slt, %159, %160 : vector<8x128xi32>
    %cst_40 = arith.constant 0.000000e+00 : f32
    %162 = vector.broadcast %cst_40 : f32 to vector<8x128xf32>
    %163 = arith.select %161, %155, %162 : vector<8x128xi1>, vector<8x128xf32>
    %164 = arith.mulf %163, %163 : vector<8x128xf32>
    %cst_41 = arith.constant dense<0.000000e+00> : vector<8xf32>
    %165 = vector.multi_reduction <add>, %164, %cst_41 [1] : vector<8x128xf32> to vector<8xf32>
    %166 = vector.shape_cast %165 : vector<8xf32> to vector<8x1xf32>
    %cst_42 = arith.constant 2.500000e-01 : f32
    %167 = vector.broadcast %cst_42 : f32 to vector<8x1xf32>
    %168 = arith.mulf %166, %167 : vector<8x1xf32>
    %c4_i32_43 = arith.constant 4 : i32
    %169 = vector.broadcast %c4_i32_43 : i32 to vector<8x128xi32>
    %170 = arith.cmpi slt, %159, %169 : vector<8x128xi32>
    %cst_44 = arith.constant 0.000000e+00 : f32
    %171 = vector.broadcast %cst_44 : f32 to vector<8x128xf32>
    %172 = arith.select %170, %136, %171 : vector<8x128xi1>, vector<8x128xf32>
    %c4_i32_45 = arith.constant 4 : i32
    %173 = vector.broadcast %c4_i32_45 : i32 to vector<8x128xi32>
    %174 = arith.cmpi eq, %159, %173 : vector<8x128xi32>
    %175 = vector.shape_cast %158 : vector<8x1xf32> to vector<8x1xf32>
    %176 = vector.broadcast %175 : vector<8x1xf32> to vector<8x128xf32>
    %177 = arith.select %174, %176, %172 : vector<8x128xi1>, vector<8x128xf32>
    %c5_i32 = arith.constant 5 : i32
    %178 = vector.broadcast %c5_i32 : i32 to vector<8x128xi32>
    %179 = arith.cmpi eq, %159, %178 : vector<8x128xi32>
    %180 = vector.shape_cast %168 : vector<8x1xf32> to vector<8x1xf32>
    %181 = vector.broadcast %180 : vector<8x1xf32> to vector<8x128xf32>
    %182 = arith.select %179, %181, %177 : vector<8x128xi1>, vector<8x128xf32>
    %c0_46 = arith.constant 0 : index
    %c0_47 = arith.constant 0 : index
    %183 = vector.load %arg7[%c0_46, %c0_47] : memref<8x128xf32, #tpu.memory_space<vmem>>, vector<8x128xf32>
    tpu.vector_store %arg7[%c0_46, %c0_47], %182 {strides = array<i32>} : memref<8x128xf32, #tpu.memory_space<vmem>>, vector<8x128xf32>,
    return
  }
  func.func @transform_0(%arg0: i32) -> (i32, i32) {
    %c0_i32 = arith.constant 0 : i32
    %c0_i32_0 = arith.constant 0 : i32
    return %arg0, %c0_i32 : i32, i32
  }
  func.func @transform_1(%arg0: i32) -> (i32, i32) {
    %c0_i32 = arith.constant 0 : i32
    %c0_i32_0 = arith.constant 0 : i32
    return %arg0, %c0_i32 : i32, i32
  }
  func.func @transform_2(%arg0: i32) -> (i32, i32) {
    %c0_i32 = arith.constant 0 : i32
    %c0_i32_0 = arith.constant 0 : i32
    return %arg0, %c0_i32 : i32, i32
  }
  func.func @transform_3(%arg0: i32) -> (i32, i32, i32) {
    %c0_i32 = arith.constant 0 : i32
    %c0_i32_0 = arith.constant 0 : i32
    %c0_i32_1 = arith.constant 0 : i32
    %c0_i32_2 = arith.constant 0 : i32
    return %c0_i32, %c0_i32_0, %c0_i32_1 : i32, i32, i32
  }
  func.func @transform_4(%arg0: i32) -> (i32, i32, i32) {
    %c0_i32 = arith.constant 0 : i32
    %c0_i32_0 = arith.constant 0 : i32
    %c0_i32_1 = arith.constant 0 : i32
    %c0_i32_2 = arith.constant 0 : i32
    return %c0_i32, %c0_i32_0, %c0_i32_1 : i32, i32, i32
  }
  func.func @transform_5(%arg0: i32) -> (i32, i32, i32) {
    %c0_i32 = arith.constant 0 : i32
    %c0_i32_0 = arith.constant 0 : i32
    %c0_i32_1 = arith.constant 0 : i32
    %c0_i32_2 = arith.constant 0 : i32
    return %c0_i32, %c0_i32_0, %c0_i32_1 : i32, i32, i32
  }
  func.func @transform_6(%arg0: i32) -> (i32, i32) {
    %c0_i32 = arith.constant 0 : i32
    %c0_i32_0 = arith.constant 0 : i32
    return %arg0, %c0_i32 : i32, i32
  }
}

</mosaic_0001>

<bundles_post_ra>
// kernel: tpu_custom_call.1
= control target key start
LH: loop header
LB: loop body
LE: loop exit
PB: predicated region body
PF: predicated region fallthrough
CT: control target
= control target key end

     0   :  { %11 = vsyncpa [#allocation3], 0  ;;  %s1687_s0 = inlined_call_operand.vmem [shape: f32[8,128], index: 0, kind: input, shape index: {}]   ;;  %s1688_s1 = inlined_call_operand.vmem [shape: f32[8,128], index: 1, kind: input, shape index: {}]   ;;  %s1689_s2 = inlined_call_operand.vmem [shape: f32[8,1], index: 2, kind: input, shape index: {}]   ;;  %s1690_s3 = inlined_call_operand.hbm [shape: f32[4,128,128], index: 3, kind: input, shape index: {}]   ;;  %s1691_s4 = inlined_call_operand.hbm [shape: f32[4,128,128], index: 4, kind: input, shape index: {}]   ;;  %s1692_s5 = inlined_call_operand.vmem [shape: f32[4,3,128], index: 5, kind: input, shape index: {}]   ;;  %s1693_s6 = inlined_call_operand.hbm [shape: f32[8,128], index: 6, kind: output, shape index: {}]  }
   0x1   :  { %12 = vsyncpa [#allocation6], 0 }
   0x2   :  { %13 = vsyncpa [#allocation4], 0  ;;  %s1422_s21 = smov [#allocation2]  }
   0x3   :  { %s25_s22 = sshll.u32 %s1422_s21, 4  ;;  %s26_s22 = int_to_ptr.vmem [resolvable:$true] %s25_s22 }
   0x4   :  { %s1364_s23 = scalar_lea.vmem %s26_s22, 8192  ;;  %p1369_p1 = scmp.lt.s32.totalorder %s26_s22, %s26_s22 }
   0x5   :  { %p1365_p0 = scmp.ne.s32.totalorder %s26_s22, %s1364_s23  ;;  %p1370_p2 = scmp.lt.s32.totalorder %s1364_s23, %s1364_s23 }
   0x7   :  { %p1371_p3 = por %p1370_p2, %p1369_p1 }
   0x9   :  { %p1372_p4 = pnand %p1371_p3, %p1365_p0 }
   0xb   :  { %1375 = shalt.err (!%p1372_p4)
}
   0xc   :  { %s1423_s24 = smov 128   ;;  %s1424_s25 = smov 8  }
   0xd   :  { %31 = dma.hbm_to_vmem [thread:$0]  %s1690_s3, 8192, %s26_s22, [#allocation3], %s1423_s24, %s1423_s24, %s1424_s25  }
   0xe   :  { %s1425_s28 = smov [#allocation5]  }
   0xf   :  { %s37_s29 = sshll.u32 %s1425_s28, 4  ;;  %s38_s29 = int_to_ptr.vmem [resolvable:$true] %s37_s29 }
  0x10   :  { %s1384_s30 = scalar_lea.vmem %s38_s29, 8192  ;;  %p1389_p6 = scmp.lt.s32.totalorder %s38_s29, %s38_s29 }
  0x11   :  { %p1385_p5 = scmp.ne.s32.totalorder %s38_s29, %s1384_s30  ;;  %p1390_p7 = scmp.lt.s32.totalorder %s1384_s30, %s1384_s30 }
  0x13   :  { %p1391_p8 = por %p1390_p7, %p1389_p6 }
  0x15   :  { %p1392_p9 = pnand %p1391_p8, %p1385_p5 }
  0x17   :  { %1395 = shalt.err (!%p1392_p9)
}
  0x18   :  { %43 = dma.hbm_to_vmem [thread:$0]  %s1691_s4, 8192, %s38_s29, [#allocation6], %s1423_s24, %s1423_s24, %s1424_s25  }
  0x19   :  { %1416 = dma.done.wait [#allocation3], 8192  }
  0x1a   :  { %1417 = vsyncadd [#allocation3], 4294959104 }
  0x1b   :  { %1418 = dma.done.wait [#allocation6], 8192  }
  0x1c   :  { %1419 = vsyncadd [#allocation6], 4294959104  ;;  %v1426_v0 = vmov 0.0   ;;  %vm1427_vm0 = vmmov 0   ;;  %v70_v1 = vld [vmem:[#allocation2 + $0x78] sm:$0xff]  ;;  %v69_v2 = vld [vmem:[#allocation2 + $0x70] sm:$0xff]  ;;  %v187_v36 = vlaneseq }
  0x1d   :  { %1049 = vmatprep.subr.mxu0 %v1426_v0  ;;  %1081 = vmatprep.mubr.msk.f32.mxu0 %vm1427_vm0, %v1426_v0  ;;  %v68_v3 = vld [vmem:[#allocation2 + $0x68] sm:$0xff]  ;;  %v67_v4 = vld [vmem:[#allocation2 + $0x60] sm:$0xff]  ;;  %v66_v5 = vld [vmem:[#allocation2 + $0x58] sm:$0xff]  ;;  %v1428_v35 = vmov 0  }
  0x1e   :  { %1084 = vmatprep.subr.mxu1 %v1426_v0  ;;  %1116 = vmatprep.mubr.msk.f32.mxu1 %vm1427_vm0, %v1426_v0  ;;  %v65_v6 = vld [vmem:[#allocation2 + $0x50] sm:$0xff]  ;;  %v64_v7 = vld [vmem:[#allocation2 + $0x48] sm:$0xff]  ;;  %v63_v8 = vld [vmem:[#allocation2 + $0x40] sm:$0xff]  ;;  %v188_v37 = vshrl.u32 %v187_v36, 7 }
  0x1f   :  { %1050 = vmatpush3.msra.mxu0 %v70_v1  ;;  %v62_v9 = vld [vmem:[#allocation2 + $0x38] sm:$0xff]  ;;  %v61_v10 = vld [vmem:[#allocation2 + $0x30] sm:$0xff]  ;;  %v60_v11 = vld [vmem:[#allocation2 + $0x28] sm:$0xff]  ;;  %1337 = vset.pattern.permute.xlu0 %v1428_v35 }
  0x20   :  { %1051 = vmatprep.subr.mxu0 %v1426_v0  ;;  %v59_v12 = vld [vmem:[#allocation2 + $0x20] sm:$0xff]  ;;  %v58_v13 = vld [vmem:[#allocation2 + $0x18] sm:$0xff]  ;;  %v57_v14 = vld [vmem:[#allocation2 + $0x10] sm:$0xff]  ;;  %v1518_v38 = vsub.s32 0, %v188_v37  ;;  %v1523_v40 = vsub.s32 1, %v188_v37  ;;  %v1526_v42 = vsub.s32 2, %v188_v37 }
  0x21   :  { %1052 = vmatpush3.msra.mxu0 %v69_v2  ;;  %v56_v15 = vld [vmem:[#allocation2 + $0x8] sm:$0xff]  ;;  %v55_v16 = vld [vmem:[#allocation2] sm:$0xff]  ;;  %v86_v18 = vld [vmem:[#allocation2 + $0xf8] sm:$0xff] }
  0x22   :  { %1053 = vmatprep.subr.mxu0 %v1426_v0  ;;  %v52_v17 = vld [vmem:[%s1687_s0] sm:$0xff]  ;;  %v85_v19 = vld [vmem:[#allocation2 + $0xf0] sm:$0xff]  ;;  %1085 = vmatpush3.msra.mxu1 %v86_v18  ;;  %v84_v20 = vld [vmem:[#allocation2 + $0xe8] sm:$0xff] }
  0x23   :  { %1054 = vmatpush3.msra.mxu0 %v68_v3  ;;  %1086 = vmatprep.subr.mxu1 %v1426_v0  ;;  %v83_v21 = vld [vmem:[#allocation2 + $0xe0] sm:$0xff]  ;;  %v82_v22 = vld [vmem:[#allocation2 + $0xd8] sm:$0xff]  ;;  %v81_v23 = vld [vmem:[#allocation2 + $0xd0] sm:$0xff] }
  0x24   :  { %1055 = vmatprep.subr.mxu0 %v1426_v0  ;;  %1087 = vmatpush3.msra.mxu1 %v85_v19  ;;  %v80_v24 = vld [vmem:[#allocation2 + $0xc8] sm:$0xff]  ;;  %v79_v25 = vld [vmem:[#allocation2 + $0xc0] sm:$0xff]  ;;  %v78_v26 = vld [vmem:[#allocation2 + $0xb8] sm:$0xff] }
  0x25   :  { %1056 = vmatpush3.msra.mxu0 %v67_v4  ;;  %1088 = vmatprep.subr.mxu1 %v1426_v0  ;;  %v77_v27 = vld [vmem:[#allocation2 + $0xb0] sm:$0xff]  ;;  %v76_v28 = vld [vmem:[#allocation2 + $0xa8] sm:$0xff]  ;;  %v75_v29 = vld [vmem:[#allocation2 + $0xa0] sm:$0xff] }
  0x26   :  { %1057 = vmatprep.subr.mxu0 %v1426_v0  ;;  %1089 = vmatpush3.msra.mxu1 %v84_v20  ;;  %v74_v30 = vld [vmem:[#allocation2 + $0x98] sm:$0xff]  ;;  %v73_v31 = vld [vmem:[#allocation2 + $0x90] sm:$0xff]  ;;  %v72_v32 = vld [vmem:[#allocation2 + $0x88] sm:$0xff] }
  0x27   :  { %1058 = vmatpush3.msra.mxu0 %v66_v5  ;;  %1090 = vmatprep.subr.mxu1 %v1426_v0  ;;  %v71_v33 = vld [vmem:[#allocation2 + $0x80] sm:$0xff]  ;;  %v102_v5 = vld [vmem:[#allocation2 + $0x178] sm:$0xff]  ;;  %v89_v18 = vld [vmem:[#allocation2 + $0x110] sm:$0xff] }
  0x28   :  { %1059 = vmatprep.subr.mxu0 %v1426_v0  ;;  %1091 = vmatpush3.msra.mxu1 %v83_v21  ;;  %v54_v34 = vld [vmem:[%s1689_s2] sm:$0xff]  ;;  %v88_v19 = vld [vmem:[#allocation2 + $0x108] sm:$0xff] }
  0x29   :  { %1060 = vmatpush3.msra.mxu0 %v65_v6  ;;  %1092 = vmatprep.subr.mxu1 %v1426_v0  ;;  %v183_v39 = vld [vmem:[%s1692_s5] sm:$0x7]  ;;  %v101_v6 = vld [vmem:[#allocation2 + $0x170] sm:$0xff]  ;;  %v184_v21 = vld [vmem:[%s1692_s5 + $0x4] sm:$0x7] }
  0x2a   :  { %1061 = vmatprep.subr.mxu0 %v1426_v0  ;;  %1093 = vmatpush3.msra.mxu1 %v82_v22  ;;  %v190_v41 = vrot.slane %v183_v39, %v1518_v38  ;;  %v264_v43 = vrot.slane %v183_v39, %v1523_v40  ;;  %v269_v46 = vrot.slane %v183_v39, %v1526_v42  ;;  %v87_v20 = vld [vmem:[#allocation2 + $0x100] sm:$0xff] }
  0x2b   :  { %1062 = vmatpush3.msra.mxu0 %v64_v7  ;;  %1094 = vmatprep.subr.mxu1 %v1426_v0  ;;  %v100_v7 = vld [vmem:[#allocation2 + $0x168] sm:$0xff]  ;;  %v296_v22 = vrot.slane %v184_v21, %v1518_v38 }
  0x2c   :  { %1063 = vmatprep.subr.mxu0 %v1426_v0  ;;  %1095 = vmatpush3.msra.mxu1 %v81_v23  ;;  %v370_v23 = vrot.slane %v184_v21, %v1523_v40 }
  0x2d   :  { %1064 = vmatpush3.msra.mxu0 %v63_v8  ;;  %1096 = vmatprep.subr.mxu1 %v1426_v0  ;;  %v99_v8 = vld [vmem:[#allocation2 + $0x160] sm:$0xff] }
  0x2e   :  { %1065 = vmatprep.subr.mxu0 %v1426_v0  ;;  %1097 = vmatpush3.msra.mxu1 %v80_v24 }
  0x2f   :  { %1066 = vmatpush3.msra.mxu0 %v62_v9  ;;  %1098 = vmatprep.subr.mxu1 %v1426_v0  ;;  %v98_v9 = vld [vmem:[#allocation2 + $0x158] sm:$0xff] }
  0x30   :  { %1067 = vmatprep.subr.mxu0 %v1426_v0  ;;  %1099 = vmatpush3.msra.mxu1 %v79_v25 }
  0x31   :  { %1068 = vmatpush3.msra.mxu0 %v61_v10  ;;  %1100 = vmatprep.subr.mxu1 %v1426_v0  ;;  %v97_v10 = vld [vmem:[#allocation2 + $0x150] sm:$0xff] }
  0x32   :  { %1069 = vmatprep.subr.mxu0 %v1426_v0  ;;  %1101 = vmatpush3.msra.mxu1 %v78_v26  ;;  %v375_v26 = vrot.slane %v184_v21, %v1526_v42  ;;  %v109_v21 = vld [vmem:[#allocation2 + $0x1b0] sm:$0xff] }
  0x33   :  { %1070 = vmatpush3.msra.mxu0 %v60_v11  ;;  %1102 = vmatprep.subr.mxu1 %v1426_v0  ;;  %v96_v11 = vld [vmem:[#allocation2 + $0x148] sm:$0xff] }
  0x34   :  { %1071 = vmatprep.subr.mxu0 %v1426_v0  ;;  %1103 = vmatpush3.msra.mxu1 %v77_v27 }
  0x35   :  { %1072 = vmatpush3.msra.mxu0 %v59_v12  ;;  %1104 = vmatprep.subr.mxu1 %v1426_v0  ;;  %v95_v12 = vld [vmem:[#allocation2 + $0x140] sm:$0xff] }
  0x36   :  { %1073 = vmatprep.subr.mxu0 %v1426_v0  ;;  %1105 = vmatpush3.msra.mxu1 %v76_v28 }
  0x37   :  { %1074 = vmatpush3.msra.mxu0 %v58_v13  ;;  %1106 = vmatprep.subr.mxu1 %v1426_v0  ;;  %v94_v13 = vld [vmem:[#allocation2 + $0x138] sm:$0xff] }
  0x38   :  { %1075 = vmatprep.subr.mxu0 %v1426_v0  ;;  %1107 = vmatpush3.msra.mxu1 %v75_v29 }
  0x39   :  { %1076 = vmatpush3.msra.mxu0 %v57_v14  ;;  %1108 = vmatprep.subr.mxu1 %v1426_v0  ;;  %v93_v14 = vld [vmem:[#allocation2 + $0x130] sm:$0xff] }
  0x3a   :  { %1077 = vmatprep.subr.mxu0 %v1426_v0  ;;  %1109 = vmatpush3.msra.mxu1 %v74_v30 }
  0x3b   :  { %1078 = vmatpush3.msra.mxu0 %v56_v15  ;;  %1110 = vmatprep.subr.mxu1 %v1426_v0  ;;  %v92_v15 = vld [vmem:[#allocation2 + $0x128] sm:$0xff] }
  0x3c   :  { %1079 = vmatprep.subr.mxu0 %v1426_v0  ;;  %1111 = vmatpush3.msra.mxu1 %v73_v31 }
  0x3d   :  { %1080 = vmatpush3.msra.mxu0 %v55_v16  ;;  %1112 = vmatprep.subr.mxu1 %v1426_v0  ;;  %v91_v16 = vld [vmem:[#allocation2 + $0x120] sm:$0xff] }
  0x3e   :  { %1082 = vmatmul.mubr.f32.vlgmr.msra.gmra.mxu0 %v52_v17  ;;  %1119 = vmatprep.subr.mxu0 %v1426_v0  ;;  %v90_v17 = vld [vmem:[#allocation2 + $0x118] sm:$0xff] }
  0x3f   :  { %1151 = vmatprep.mubr.msk.f32.mxu0 %vm1427_vm0, %v1426_v0  ;;  %1113 = vmatpush3.msra.mxu1 %v72_v32 }
  0x40   :  { %1114 = vmatprep.subr.mxu1 %v1426_v0  ;;  %591 = vperm.xlu0 %1337, %v54_v34  }
  0x41   :  { %1115 = vmatpush3.msra.mxu1 %v71_v33  ;;  %1120 = vmatpush3.msra.mxu0 %v102_v5  ;;  %v170_v5 = vld [vmem:[#allocation5 + $0x198] sm:$0xff] }
  0x42   :  { %1154 = vmatprep.subr.mxu1 %v1426_v0  ;;  %1121 = vmatprep.subr.mxu0 %v1426_v0 }
  0x43   :  { %1122 = vmatpush3.msra.mxu0 %v101_v6 }
  0x44   :  { %1123 = vmatprep.subr.mxu0 %v1426_v0 }
  0x45   :  { %1124 = vmatpush3.msra.mxu0 %v100_v7 }
  0x46   :  { %1125 = vmatprep.subr.mxu0 %v1426_v0 }
  0x47   :  { %1126 = vmatpush3.msra.mxu0 %v99_v8  ;;  %v169_v8 = vld [vmem:[#allocation5 + $0x190] sm:$0xff] }
  0x48   :  { %1127 = vmatprep.subr.mxu0 %v1426_v0 }
  0x49   :  { %1128 = vmatpush3.msra.mxu0 %v98_v9  ;;  %v168_v9 = vld [vmem:[#allocation5 + $0x188] sm:$0xff] }
  0x4a   :  { %1129 = vmatprep.subr.mxu0 %v1426_v0 }
  0x4b   :  { %1130 = vmatpush3.msra.mxu0 %v97_v10 }
  0x4c   :  { %1131 = vmatprep.subr.mxu0 %v1426_v0 }
  0x4d   :  { %1132 = vmatpush3.msra.mxu0 %v96_v11  ;;  %v167_v11 = vld [vmem:[#allocation5 + $0x180] sm:$0xff] }
  0x4e   :  { %1133 = vmatprep.subr.mxu0 %v1426_v0 }
  0x4f   :  { %1134 = vmatpush3.msra.mxu0 %v95_v12  ;;  %v118_v12 = vld [vmem:[#allocation2 + $0x1f8] sm:$0xff] }
  0x50   :  { %1135 = vmatprep.subr.mxu0 %v1426_v0 }
  0x51   :  { %1136 = vmatpush3.msra.mxu0 %v94_v13  ;;  %v117_v13 = vld [vmem:[#allocation2 + $0x1f0] sm:$0xff] }
  0x52   :  { %1137 = vmatprep.subr.mxu0 %v1426_v0 }
  0x53   :  { %1138 = vmatpush3.msra.mxu0 %v93_v14  ;;  %v116_v14 = vld [vmem:[#allocation2 + $0x1e8] sm:$0xff] }
  0x54   :  { %1139 = vmatprep.subr.mxu0 %v1426_v0 }
  0x55   :  { %1140 = vmatpush3.msra.mxu0 %v92_v15  ;;  %v115_v15 = vld [vmem:[#allocation2 + $0x1e0] sm:$0xff] }
  0x56   :  { %1141 = vmatprep.subr.mxu0 %v1426_v0 }
  0x57   :  { %1142 = vmatpush3.msra.mxu0 %v91_v16  ;;  %v114_v16 = vld [vmem:[#allocation2 + $0x1d8] sm:$0xff] }
  0x58   :  { %1143 = vmatprep.subr.mxu0 %v1426_v0 }
  0x59   :  { %1144 = vmatpush3.msra.mxu0 %v90_v17  ;;  %v113_v17 = vld [vmem:[#allocation2 + $0x1d0] sm:$0xff] }
  0x5a   :  { %1145 = vmatprep.subr.mxu0 %v1426_v0 }
  0x5b   :  { %1146 = vmatpush3.msra.mxu0 %v89_v18  ;;  %v112_v18 = vld [vmem:[#allocation2 + $0x1c8] sm:$0xff] }
  0x5c   :  { %1147 = vmatprep.subr.mxu0 %v1426_v0 }
  0x5d   :  { %1148 = vmatpush3.msra.mxu0 %v88_v19  ;;  %v111_v19 = vld [vmem:[#allocation2 + $0x1c0] sm:$0xff] }
  0x5e   :  { %1149 = vmatprep.subr.mxu0 %v1426_v0 }
  0x5f   :  { %1150 = vmatpush3.msra.mxu0 %v87_v20  ;;  %v110_v20 = vld [vmem:[#allocation2 + $0x1b8] sm:$0xff] }
  0x60   :  { %1189 = vmatprep.subr.mxu0 %v1426_v0 }
  0xfe   :  { %v257_v44 = vpop.f32.mrf.mxu0 }
  0xff   :  { %v258_v45 = vadd.f32 %v257_v44, %v190_v41 }
 0x100   :  { %v1083_v47 = vpop.f32.mrf.mxu0 }
 0x101   :  { %v265_v48 = vmul.f32 %v264_v43, %v258_v45 }
 0x103   :  { %v270_v49 = vadd.f32 %v269_v46, %v265_v48 }
 0x105   :  { %v271_v50 = vand.u32 2147483647, %v270_v49  ;;  %vm278_vm1 = vcmp.ge.f32.partialorder %v270_v49, 0.0  ;;  %v281_v63 = vmax.f32 %v270_v49, 0.0 }
 0x107   :  { %v272_v51 = vsub.f32 0.0, %v271_v50 }
 0x109   :  { %v273_v52 = vmul.f32 1.442695, %v272_v51 }
 0x10b   :  { %1338 = vpow2.f32 %v273_v52  ;;  %v182_v52 = vld [vmem:[#allocation5 + $0x1f8] sm:$0xff] }
 0x118   :  { %v1339_v53 = vpop.eup %1338 }
 0x119   :  { %v275_v54 = vadd.f32 1.0, %v1339_v53  ;;  %v285_v55 = vmul.f32 -0.5, %v1339_v53  ;;  %v288_v57 = vand.u32 2147483647, %v1339_v53 }
 0x11b   :  { %1340 = vrcp.f32 %v275_v54  ;;  %v286_v56 = vadd.f32 1.0, %v285_v55  ;;  %vm289_vm2 = vcmp.lt.f32.partialorder %v288_v57, 0.0004427343  ;;  %v179_v55 = vld [vmem:[#allocation5 + $0x1e0] sm:$0xff]  ;;  %v177_v57 = vld [vmem:[#allocation5 + $0x1d0] sm:$0xff] }
 0x11c   :  { %1342 = vlog2.f32 %v275_v54  ;;  %v180_v54 = vld [vmem:[#allocation5 + $0x1e8] sm:$0xff] }
 0x11d   :  { %v287_v62 = vmul.f32 %v1339_v53, %v286_v56  ;;  %v181_v53 = vld [vmem:[#allocation5 + $0x1f0] sm:$0xff]  ;;  %v178_v56 = vld [vmem:[#allocation5 + $0x1d8] sm:$0xff] }
 0x128   :  { %v1341_v58 = vpop.eup %1340 }
 0x129   :  { %v1343_v59 = vpop.eup %1342  ;;  %v279_v60 = vsub.f32 1.0, %v1341_v58 }
 0x12a   :  { %v284_v61 = vmul.f32 0.6931472, %v1343_v59  ;;  %v175_v59 = vld [vmem:[#allocation5 + $0x1c0] sm:$0xff] }
 0x12b   :  { %v280_v1 = vsel %vm278_vm1, %v1341_v58, %v279_v60  ;;  %v176_v58 = vld [vmem:[#allocation5 + $0x1c8] sm:$0xff]  ;;  %v174_v60 = vld [vmem:[#allocation5 + $0x1b8] sm:$0xff] }
 0x12c   :  { %v290_v2 = vsel %vm289_vm2, %v287_v62, %v284_v61  ;;  %v1530_v3 = vmul.f32 %v280_v1, %v264_v43  ;;  %v173_v61 = vld [vmem:[#allocation5 + $0x1b0] sm:$0xff]  ;;  %v172_v62 = vld [vmem:[#allocation5 + $0x1a8] sm:$0xff] }
 0x12d   :  { %v291_v4 = vadd.f32 %v290_v2, %v281_v63  ;;  %v171_v63 = vld [vmem:[#allocation5 + $0x1a0] sm:$0xff]  ;;  %v1573_v1 = vld [vmem:[%s1692_s5 + $0xc] sm:$0x7]  ;;  %v1575_v2 = vpop.permute.xlu0 %591 }
 0x12e   :  { %v1586_v6 = vrot.slane %v1573_v1, %v1523_v40 }
 0x12f   :  { %1117 = vmatmul.mubr.f32.vlgmr.msra.gmra.mxu1 %v291_v4  ;;  %v1580_v4 = vld [vmem:[%s1688_s1] sm:$0xff] }
 0x130   :  { %1186 = vmatprep.mubr.msk.f32.mxu1 %vm1427_vm0, %v1426_v0  ;;  %v595_v7 = vmul.f32 %v1575_v2, %v1580_v4  ;;  %1155 = vmatpush3.msra.mxu1 %v118_v12  ;;  %v157_v12 = vld [vmem:[#allocation5 + $0x130] sm:$0xff] }
 0x131   :  { %1156 = vmatprep.subr.mxu1 %v1426_v0 }
 0x132   :  { %v596_v10 = vmul.f32 %v595_v7, %v1586_v6  ;;  %1157 = vmatpush3.msra.mxu1 %v117_v13  ;;  %v162_v7 = vld [vmem:[#allocation5 + $0x158] sm:$0xff]  ;;  %v156_v13 = vld [vmem:[#allocation5 + $0x128] sm:$0xff] }
 0x133   :  { %1158 = vmatprep.subr.mxu1 %v1426_v0 }
 0x134   :  { %1159 = vmatpush3.msra.mxu1 %v116_v14  ;;  %v155_v14 = vld [vmem:[#allocation5 + $0x120] sm:$0xff] }
 0x135   :  { %1160 = vmatprep.subr.mxu1 %v1426_v0 }
 0x136   :  { %1161 = vmatpush3.msra.mxu1 %v115_v15  ;;  %v154_v15 = vld [vmem:[#allocation5 + $0x118] sm:$0xff] }
 0x137   :  { %1162 = vmatprep.subr.mxu1 %v1426_v0 }
 0x138   :  { %1163 = vmatpush3.msra.mxu1 %v114_v16  ;;  %v153_v16 = vld [vmem:[#allocation5 + $0x110] sm:$0xff] }
 0x139   :  { %1164 = vmatprep.subr.mxu1 %v1426_v0 }
 0x13a   :  { %1165 = vmatpush3.msra.mxu1 %v113_v17  ;;  %v152_v17 = vld [vmem:[#allocation5 + $0x108] sm:$0xff] }
 0x13b   :  { %1166 = vmatprep.subr.mxu1 %v1426_v0 }
 0x13c   :  { %1167 = vmatpush3.msra.mxu1 %v112_v18  ;;  %v151_v18 = vld [vmem:[#allocation5 + $0x100] sm:$0xff] }
 0x13d   :  { %1168 = vmatprep.subr.mxu1 %v1426_v0 }
 0x13e   :  { %1169 = vmatpush3.msra.mxu1 %v111_v19 }
 0x13f   :  { %1170 = vmatprep.subr.mxu1 %v1426_v0 }
 0x140   :  { %1171 = vmatpush3.msra.mxu1 %v110_v20  ;;  %v150_v20 = vld [vmem:[#allocation5 + $0xf8] sm:$0xff] }
 0x141   :  { %1172 = vmatprep.subr.mxu1 %v1426_v0 }
 0x142   :  { %1173 = vmatpush3.msra.mxu1 %v109_v21  ;;  %v149_v21 = vld [vmem:[#allocation5 + $0xf0] sm:$0xff] }
 0x143   :  { %1174 = vmatprep.subr.mxu1 %v1426_v0 }
 0x1ef   :  { %v363_v24 = vpop.f32.mrf.mxu1 }
 0x1f0   :  { %v364_v25 = vadd.f32 %v363_v24, %v296_v22  ;;  %v108_v22 = vld [vmem:[#allocation2 + $0x1a8] sm:$0xff]  ;;  %v106_v24 = vld [vmem:[#allocation2 + $0x198] sm:$0xff] }
 0x1f1   :  { %v1118_v27 = vpop.f32.mrf.mxu1  ;;  %1175 = vmatpush3.msra.mxu1 %v108_v22  ;;  %v148_v22 = vld [vmem:[#allocation5 + $0xe8] sm:$0xff] }
 0x1f2   :  { %v371_v28 = vmul.f32 %v370_v23, %v364_v25  ;;  %1176 = vmatprep.subr.mxu1 %v1426_v0  ;;  %v105_v25 = vld [vmem:[#allocation2 + $0x190] sm:$0xff]  ;;  %v103_v27 = vld [vmem:[#allocation2 + $0x180] sm:$0xff] }
 0x1f4   :  { %v376_v29 = vadd.f32 %v375_v26, %v371_v28  ;;  %v104_v26 = vld [vmem:[#allocation2 + $0x188] sm:$0xff] }
 0x1f5   :  { %v185_v28 = vld [vmem:[%s1692_s5 + $0x8] sm:$0x7]  ;;  %s1429_s5 = smov [#allocation7]  }
 0x1f6   :  { %v377_v30 = vand.u32 2147483647, %v376_v29  ;;  %vm384_vm3 = vcmp.ge.f32.partialorder %v376_v29, 0.0  ;;  %v387_v47 = vmax.f32 %v376_v29, 0.0  ;;  %v402_v29 = vrot.slane %v185_v28, %v1518_v38  ;;  %s903_s18 = sshll.u32 %s1429_s5, 4  ;;  %s904_s18 = int_to_ptr.vmem [resolvable:$true] %s903_s18 }
 0x1f7   :  { %s1396_s19 = scalar_lea.vmem %s904_s18, 128  ;;  %p1401_p11 = scmp.lt.s32.totalorder %s904_s18, %s904_s18 }
 0x1f8   :  { %v378_v31 = vsub.f32 0.0, %v377_v30  ;;  %v476_v30 = vrot.slane %v185_v28, %v1523_v40  ;;  %p1397_p10 = scmp.ne.s32.totalorder %s904_s18, %s1396_s19  ;;  %p1402_p12 = scmp.lt.s32.totalorder %s1396_s19, %s1396_s19 }
 0x1fa   :  { %v379_v32 = vmul.f32 1.442695, %v378_v31  ;;  %p1403_p13 = por %p1402_p12, %p1401_p11 }
 0x1fc   :  { %1344 = vpow2.f32 %v379_v32  ;;  %p1404_p0 = pnand %p1403_p13, %p1397_p10 }
 0x209   :  { %v1345_v33 = vpop.eup %1344 }
 0x20a   :  { %v381_v34 = vadd.f32 1.0, %v1345_v33  ;;  %v391_v35 = vmul.f32 -0.5, %v1345_v33  ;;  %v394_v39 = vand.u32 2147483647, %v1345_v33 }
 0x20c   :  { %1346 = vrcp.f32 %v381_v34  ;;  %v392_v37 = vadd.f32 1.0, %v391_v35  ;;  %vm395_vm4 = vcmp.lt.f32.partialorder %v394_v39, 0.0004427343 }
 0x20d   :  { %1348 = vlog2.f32 %v381_v34 }
 0x20e   :  { %v393_v46 = vmul.f32 %v1345_v33, %v392_v37  ;;  %v481_v33 = vrot.slane %v185_v28, %v1526_v42  ;;  %v142_v28 = vld [vmem:[#allocation5 + $0xb8] sm:$0xff] }
 0x219   :  { %v1347_v41 = vpop.eup %1346 }
 0x21a   :  { %v1349_v43 = vpop.eup %1348  ;;  %v385_v44 = vsub.f32 1.0, %v1347_v41 }
 0x21b   :  { %v390_v45 = vmul.f32 0.6931472, %v1349_v43 }
 0x21c   :  { %v386_v48 = vsel %vm384_vm3, %v1347_v41, %v385_v44 }
 0x21d   :  { %v396_v49 = vsel %vm395_vm4, %v393_v46, %v390_v45  ;;  %v1556_v50 = vmul.f32 %v386_v48, %v370_v23  ;;  %v107_v23 = vld [vmem:[#allocation2 + $0x1a0] sm:$0xff] }
 0x21e   :  { %v397_v51 = vadd.f32 %v396_v49, %v387_v47  ;;  %1177 = vmatpush3.msra.mxu1 %v107_v23  ;;  %v147_v23 = vld [vmem:[#allocation5 + $0xe0] sm:$0xff] }
 0x21f   :  { %1178 = vmatprep.subr.mxu1 %v1426_v0 }
 0x220   :  { %1152 = vmatmul.mubr.f32.vlgmr.msra.gmra.mxu0 %v397_v51  ;;  %1179 = vmatpush3.msra.mxu1 %v106_v24  ;;  %v146_v24 = vld [vmem:[#allocation5 + $0xd8] sm:$0xff] }
 0x221   :  { %1190 = vmatpush3.msra.mxu0 %v182_v52  ;;  %1221 = vmatprep.mubr.msk.f32.mxu0 %vm1427_vm0, %v1426_v0 }
 0x222   :  { %1191 = vmatprep.subr.mxu0 %v1426_v0  ;;  %1180 = vmatprep.subr.mxu1 %v1426_v0 }
 0x223   :  { %1192 = vmatpush3.msra.mxu0 %v181_v53  ;;  %1181 = vmatpush3.msra.mxu1 %v105_v25  ;;  %v145_v25 = vld [vmem:[#allocation5 + $0xd0] sm:$0xff] }
 0x224   :  { %1193 = vmatprep.subr.mxu0 %v1426_v0  ;;  %1182 = vmatprep.subr.mxu1 %v1426_v0 }
 0x225   :  { %1194 = vmatpush3.msra.mxu0 %v180_v54  ;;  %1183 = vmatpush3.msra.mxu1 %v104_v26  ;;  %v144_v26 = vld [vmem:[#allocation5 + $0xc8] sm:$0xff] }
 0x226   :  { %1195 = vmatprep.subr.mxu0 %v1426_v0  ;;  %1184 = vmatprep.subr.mxu1 %v1426_v0 }
 0x227   :  { %1196 = vmatpush3.msra.mxu0 %v179_v55  ;;  %1185 = vmatpush3.msra.mxu1 %v103_v27  ;;  %v143_v27 = vld [vmem:[#allocation5 + $0xc0] sm:$0xff] }
 0x228   :  { %1197 = vmatprep.subr.mxu0 %v1426_v0  ;;  %1224 = vmatprep.subr.mxu1 %v1426_v0 }
 0x229   :  { %1198 = vmatpush3.msra.mxu0 %v178_v56 }
 0x22a   :  { %1199 = vmatprep.subr.mxu0 %v1426_v0 }
 0x22b   :  { %1200 = vmatpush3.msra.mxu0 %v177_v57 }
 0x22c   :  { %1201 = vmatprep.subr.mxu0 %v1426_v0 }
 0x22d   :  { %1202 = vmatpush3.msra.mxu0 %v176_v58 }
 0x22e   :  { %1203 = vmatprep.subr.mxu0 %v1426_v0 }
 0x22f   :  { %1204 = vmatpush3.msra.mxu0 %v175_v59 }
 0x230   :  { %1205 = vmatprep.subr.mxu0 %v1426_v0 }
 0x231   :  { %1206 = vmatpush3.msra.mxu0 %v174_v60 }
 0x232   :  { %1207 = vmatprep.subr.mxu0 %v1426_v0 }
 0x233   :  { %1208 = vmatpush3.msra.mxu0 %v173_v61  ;;  %v166_v61 = vld [vmem:[#allocation5 + $0x178] sm:$0xff] }
 0x234   :  { %1209 = vmatprep.subr.mxu0 %v1426_v0 }
 0x235   :  { %1210 = vmatpush3.msra.mxu0 %v172_v62  ;;  %v165_v62 = vld [vmem:[#allocation5 + $0x170] sm:$0xff] }
 0x236   :  { %1211 = vmatprep.subr.mxu0 %v1426_v0 }
 0x237   :  { %1212 = vmatpush3.msra.mxu0 %v171_v63  ;;  %v164_v63 = vld [vmem:[#allocation5 + $0x168] sm:$0xff] }
 0x238   :  { %1213 = vmatprep.subr.mxu0 %v1426_v0 }
 0x239   :  { %1214 = vmatpush3.msra.mxu0 %v170_v5  ;;  %v163_v5 = vld [vmem:[#allocation5 + $0x160] sm:$0xff] }
 0x23a   :  { %1215 = vmatprep.subr.mxu0 %v1426_v0 }
 0x23b   :  { %1216 = vmatpush3.msra.mxu0 %v169_v8  ;;  %v161_v8 = vld [vmem:[#allocation5 + $0x150] sm:$0xff] }
 0x23c   :  { %1217 = vmatprep.subr.mxu0 %v1426_v0 }
 0x23d   :  { %1218 = vmatpush3.msra.mxu0 %v168_v9  ;;  %v160_v9 = vld [vmem:[#allocation5 + $0x148] sm:$0xff] }
 0x23e   :  { %1219 = vmatprep.subr.mxu0 %v1426_v0 }
 0x23f   :  { %1220 = vmatpush3.msra.mxu0 %v167_v11  ;;  %v158_v11 = vld [vmem:[#allocation5 + $0x138] sm:$0xff] }
 0x240   :  { %1222 = vmatmul.mubr.f32.vlgmr.msra.gmra.mxu0 %v596_v10  ;;  %1259 = vmatprep.subr.mxu0 %v1426_v0  ;;  %v159_v10 = vld [vmem:[#allocation5 + $0x140] sm:$0xff] }
 0x241   :  { %1291 = vmatprep.mubr.msk.f32.mxu0 %vm1427_vm0, %v1426_v0  ;;  %1260 = vmatpush3.msra.mxu0 %v150_v20 }
 0x242   :  { %1261 = vmatprep.subr.mxu0 %v1426_v0 }
 0x243   :  { %1262 = vmatpush3.msra.mxu0 %v149_v21 }
 0x244   :  { %1263 = vmatprep.subr.mxu0 %v1426_v0 }
 0x245   :  { %1264 = vmatpush3.msra.mxu0 %v148_v22 }
 0x246   :  { %1265 = vmatprep.subr.mxu0 %v1426_v0 }
 0x247   :  { %1266 = vmatpush3.msra.mxu0 %v147_v23 }
 0x248   :  { %1267 = vmatprep.subr.mxu0 %v1426_v0 }
 0x249   :  { %1268 = vmatpush3.msra.mxu0 %v146_v24 }
 0x24a   :  { %1269 = vmatprep.subr.mxu0 %v1426_v0 }
 0x24b   :  { %1270 = vmatpush3.msra.mxu0 %v145_v25 }
 0x24c   :  { %1271 = vmatprep.subr.mxu0 %v1426_v0 }
 0x24d   :  { %1272 = vmatpush3.msra.mxu0 %v144_v26 }
 0x24e   :  { %1273 = vmatprep.subr.mxu0 %v1426_v0 }
 0x24f   :  { %1274 = vmatpush3.msra.mxu0 %v143_v27 }
 0x250   :  { %1275 = vmatprep.subr.mxu0 %v1426_v0 }
 0x251   :  { %1276 = vmatpush3.msra.mxu0 %v142_v28 }
 0x252   :  { %1277 = vmatprep.subr.mxu0 %v1426_v0 }
 0x2e0   :  { %v469_v31 = vpop.f32.mrf.mxu0 }
 0x2e1   :  { %v470_v32 = vadd.f32 %v469_v31, %v402_v29  ;;  %v141_v29 = vld [vmem:[#allocation5 + $0xb0] sm:$0xff]  ;;  %v139_v31 = vld [vmem:[#allocation5 + $0xa0] sm:$0xff] }
 0x2e2   :  { %v1153_v34 = vpop.f32.mrf.mxu0  ;;  %1278 = vmatpush3.msra.mxu0 %v141_v29 }
 0x2e3   :  { %v477_v35 = vmul.f32 %v476_v30, %v470_v32  ;;  %1279 = vmatprep.subr.mxu0 %v1426_v0  ;;  %v138_v32 = vld [vmem:[#allocation5 + $0x98] sm:$0xff]  ;;  %v136_v34 = vld [vmem:[#allocation5 + $0x88] sm:$0xff] }
 0x2e5   :  { %v482_v37 = vadd.f32 %v481_v33, %v477_v35  ;;  %v137_v33 = vld [vmem:[#allocation5 + $0x90] sm:$0xff]  ;;  %v135_v35 = vld [vmem:[#allocation5 + $0x80] sm:$0xff] }
 0x2e7   :  { %v483_v39 = vand.u32 2147483647, %v482_v37  ;;  %vm490_vm5 = vcmp.ge.f32.partialorder %v482_v37, 0.0  ;;  %v493_v56 = vmax.f32 %v482_v37, 0.0  ;;  %v134_v37 = vld [vmem:[#allocation5 + $0x78] sm:$0xff] }
 0x2e9   :  { %v484_v41 = vsub.f32 0.0, %v483_v39  ;;  %v133_v39 = vld [vmem:[#allocation5 + $0x70] sm:$0xff] }
 0x2eb   :  { %v485_v43 = vmul.f32 1.442695, %v484_v41  ;;  %v132_v41 = vld [vmem:[#allocation5 + $0x68] sm:$0xff] }
 0x2ed   :  { %1350 = vpow2.f32 %v485_v43  ;;  %v131_v43 = vld [vmem:[#allocation5 + $0x60] sm:$0xff] }
 0x2fa   :  { %v1351_v44 = vpop.eup %1350 }
 0x2fb   :  { %v487_v45 = vadd.f32 1.0, %v1351_v44  ;;  %v497_v48 = vmul.f32 -0.5, %v1351_v44  ;;  %v500_v49 = vand.u32 2147483647, %v1351_v44 }
 0x2fd   :  { %1352 = vrcp.f32 %v487_v45  ;;  %v498_v40 = vadd.f32 1.0, %v497_v48  ;;  %vm501_vm6 = vcmp.lt.f32.partialorder %v500_v49, 0.0004427343  ;;  %v126_v48 = vld [vmem:[#allocation5 + $0x38] sm:$0xff]  ;;  %v124_v49 = vld [vmem:[#allocation5 + $0x28] sm:$0xff] }
 0x2fe   :  { %1354 = vlog2.f32 %v487_v45  ;;  %v129_v45 = vld [vmem:[#allocation5 + $0x50] sm:$0xff] }
 0x2ff   :  { %v499_v55 = vmul.f32 %v1351_v44, %v498_v40  ;;  %v130_v44 = vld [vmem:[#allocation5 + $0x58] sm:$0xff]  ;;  %v125_v40 = vld [vmem:[#allocation5 + $0x30] sm:$0xff] }
 0x300   :  { %v1619_v46 = vpop.f32.mrf.mxu0 }
 0x302   :  { %v1223_v47 = vpop.f32.mrf.mxu0 }
 0x303   :  { %v127_v47 = vld [vmem:[#allocation5 + $0x40] sm:$0xff] }
 0x30a   :  { %v1353_v51 = vpop.eup %1352 }
 0x30b   :  { %v1355_v52 = vpop.eup %1354  ;;  %v491_v53 = vsub.f32 1.0, %v1353_v51 }
 0x30c   :  { %v496_v54 = vmul.f32 0.6931472, %v1355_v52  ;;  %v122_v52 = vld [vmem:[#allocation5 + $0x18] sm:$0xff] }
 0x30d   :  { %v492_v57 = vsel %vm490_vm5, %v1353_v51, %v491_v53  ;;  %v123_v51 = vld [vmem:[#allocation5 + $0x20] sm:$0xff]  ;;  %v121_v53 = vld [vmem:[#allocation5 + $0x10] sm:$0xff] }
 0x30e   :  { %v504_v58 = vmul.f32 %v492_v57, %v476_v30  ;;  %v502_v59 = vsel %vm501_vm6, %v499_v55, %v496_v54  ;;  %v140_v30 = vld [vmem:[#allocation5 + $0xa8] sm:$0xff] }
 0x30f   :  { %v503_v60 = vadd.f32 %v502_v59, %v493_v56  ;;  %1280 = vmatpush3.msra.mxu0 %v140_v30  ;;  %v120_v59 = vld [vmem:[#allocation5 + $0x8] sm:$0xff] }
 0x310   :  { %v667_v19 = vmul.f32 %v1619_v46, %v504_v58  ;;  %1281 = vmatprep.subr.mxu0 %v1426_v0  ;;  %v128_v46 = vld [vmem:[#allocation5 + $0x48] sm:$0xff] }
 0x311   :  { %1187 = vmatmul.mubr.f32.vlgmr.msra.gmra.mxu1 %v503_v60  ;;  %1282 = vmatpush3.msra.mxu0 %v139_v31  ;;  %v119_v60 = vld [vmem:[#allocation5] sm:$0xff] }
 0x312   :  { %1225 = vmatpush3.msra.mxu1 %v166_v61  ;;  %1256 = vmatprep.mubr.msk.f32.mxu1 %vm1427_vm0, %v1426_v0 }
 0x313   :  { %1226 = vmatprep.subr.mxu1 %v1426_v0  ;;  %1283 = vmatprep.subr.mxu0 %v1426_v0 }
 0x314   :  { %1227 = vmatpush3.msra.mxu1 %v165_v62  ;;  %1284 = vmatpush3.msra.mxu0 %v138_v32 }
 0x315   :  { %1228 = vmatprep.subr.mxu1 %v1426_v0  ;;  %1285 = vmatprep.subr.mxu0 %v1426_v0 }
 0x316   :  { %1229 = vmatpush3.msra.mxu1 %v164_v63  ;;  %1286 = vmatpush3.msra.mxu0 %v137_v33 }
 0x317   :  { %1230 = vmatprep.subr.mxu1 %v1426_v0  ;;  %1287 = vmatprep.subr.mxu0 %v1426_v0 }
 0x318   :  { %1231 = vmatpush3.msra.mxu1 %v163_v5  ;;  %1288 = vmatpush3.msra.mxu0 %v136_v34  ;;  %v884_v5 = vand.u32 127, %v187_v36 }
 0x319   :  { %1232 = vmatprep.subr.mxu1 %v1426_v0  ;;  %1289 = vmatprep.subr.mxu0 %v1426_v0 }
 0x31a   :  { %1233 = vmatpush3.msra.mxu1 %v162_v7  ;;  %1290 = vmatpush3.msra.mxu0 %v135_v35  ;;  %vm885_vm7 = vcmp.lt.s32.totalorder %v884_v5, 4  ;;  %vm892_vm8 = vcmp.eq.s32.totalorder %v884_v5, 4  ;;  %vm894_vm9 = vcmp.eq.s32.totalorder %v884_v5, 5 }
 0x31b   :  { %1234 = vmatprep.subr.mxu1 %v1426_v0 }
 0x31c   :  { %1235 = vmatpush3.msra.mxu1 %v161_v8 }
 0x31d   :  { %1236 = vmatprep.subr.mxu1 %v1426_v0 }
 0x31e   :  { %1237 = vmatpush3.msra.mxu1 %v160_v9 }
 0x31f   :  { %1238 = vmatprep.subr.mxu1 %v1426_v0 }
 0x320   :  { %1239 = vmatpush3.msra.mxu1 %v159_v10 }
 0x321   :  { %1240 = vmatprep.subr.mxu1 %v1426_v0 }
 0x322   :  { %1241 = vmatpush3.msra.mxu1 %v158_v11 }
 0x323   :  { %1242 = vmatprep.subr.mxu1 %v1426_v0 }
 0x324   :  { %1243 = vmatpush3.msra.mxu1 %v157_v12  ;;  %v587_v12 = vrot.slane %v1573_v1, %v1526_v42 }
 0x325   :  { %1244 = vmatprep.subr.mxu1 %v1426_v0 }
 0x326   :  { %1245 = vmatpush3.msra.mxu1 %v156_v13 }
 0x327   :  { %1246 = vmatprep.subr.mxu1 %v1426_v0 }
 0x328   :  { %1247 = vmatpush3.msra.mxu1 %v155_v14 }
 0x329   :  { %1248 = vmatprep.subr.mxu1 %v1426_v0 }
 0x32a   :  { %1249 = vmatpush3.msra.mxu1 %v154_v15 }
 0x32b   :  { %1250 = vmatprep.subr.mxu1 %v1426_v0 }
 0x32c   :  { %1251 = vmatpush3.msra.mxu1 %v153_v16 }
 0x32d   :  { %1252 = vmatprep.subr.mxu1 %v1426_v0 }
 0x32e   :  { %1253 = vmatpush3.msra.mxu1 %v152_v17 }
 0x32f   :  { %1254 = vmatprep.subr.mxu1 %v1426_v0 }
 0x330   :  { %1255 = vmatpush3.msra.mxu1 %v151_v18 }
 0x331   :  { %1257 = vmatmul.mubr.f32.vlgmr.msra.gmra.mxu1 %v667_v19  ;;  %1294 = vmatprep.subr.mxu1 %v1426_v0 }
 0x332   :  { %1326 = vmatprep.mubr.msk.f32.mxu1 %vm1427_vm0, %v1426_v0  ;;  %1295 = vmatpush3.msra.mxu1 %v134_v37 }
 0x333   :  { %1296 = vmatprep.subr.mxu1 %v1426_v0 }
 0x334   :  { %1297 = vmatpush3.msra.mxu1 %v133_v39 }
 0x335   :  { %1298 = vmatprep.subr.mxu1 %v1426_v0 }
 0x336   :  { %1299 = vmatpush3.msra.mxu1 %v132_v41 }
 0x337   :  { %1300 = vmatprep.subr.mxu1 %v1426_v0 }
 0x338   :  { %1301 = vmatpush3.msra.mxu1 %v131_v43 }
 0x339   :  { %1302 = vmatprep.subr.mxu1 %v1426_v0 }
 0x33a   :  { %1303 = vmatpush3.msra.mxu1 %v130_v44 }
 0x33b   :  { %1304 = vmatprep.subr.mxu1 %v1426_v0 }
 0x33c   :  { %1305 = vmatpush3.msra.mxu1 %v129_v45 }
 0x33d   :  { %1306 = vmatprep.subr.mxu1 %v1426_v0 }
 0x33e   :  { %1307 = vmatpush3.msra.mxu1 %v128_v46 }
 0x33f   :  { %1308 = vmatprep.subr.mxu1 %v1426_v0 }
 0x340   :  { %1309 = vmatpush3.msra.mxu1 %v127_v47 }
 0x341   :  { %1310 = vmatprep.subr.mxu1 %v1426_v0 }
 0x342   :  { %1311 = vmatpush3.msra.mxu1 %v126_v48 }
 0x343   :  { %1312 = vmatprep.subr.mxu1 %v1426_v0 }
 0x344   :  { %1313 = vmatpush3.msra.mxu1 %v125_v40 }
 0x345   :  { %1314 = vmatprep.subr.mxu1 %v1426_v0 }
 0x346   :  { %1315 = vmatpush3.msra.mxu1 %v124_v49 }
 0x347   :  { %1316 = vmatprep.subr.mxu1 %v1426_v0 }
 0x348   :  { %1317 = vmatpush3.msra.mxu1 %v123_v51 }
 0x349   :  { %1318 = vmatprep.subr.mxu1 %v1426_v0 }
 0x34a   :  { %1319 = vmatpush3.msra.mxu1 %v122_v52 }
 0x34b   :  { %1320 = vmatprep.subr.mxu1 %v1426_v0 }
 0x34c   :  { %1321 = vmatpush3.msra.mxu1 %v121_v53 }
 0x34d   :  { %1322 = vmatprep.subr.mxu1 %v1426_v0 }
 0x34e   :  { %1323 = vmatpush3.msra.mxu1 %v120_v59 }
 0x34f   :  { %1324 = vmatprep.subr.mxu1 %v1426_v0  ;;  %v508_v0 = vrot.slane %v1573_v1, %v1518_v38 }
 0x350   :  { %1325 = vmatpush3.msra.mxu1 %v119_v60 }
 0x3d1   :  { %v575_v54 = vpop.f32.mrf.mxu1 }
 0x3d2   :  { %v576_v11 = vadd.f32 %v575_v54, %v508_v0 }
 0x3d3   :  { %v1188_v55 = vpop.f32.mrf.mxu1 }
 0x3f1   :  { %v734_v56 = vpop.f32.mrf.mxu1 }
 0x3f2   :  { %v738_v57 = vmul.f32 %v734_v56, %v1556_v50 }
 0x3f3   :  { %v1258_v58 = vpop.f32.mrf.mxu1 }
 0x3f4   :  { %1292 = vmatmul.mubr.f32.vlgmr.msra.gmra.mxu0 %v738_v57 }
 0x4b4   :  { %v805_v61 = vpop.f32.mrf.mxu0 }
 0x4b5   :  { %v809_v62 = vmul.f32 %v805_v61, %v1530_v3  ;;  %v583_v3 = vmul.f32 %v1586_v6, %v576_v11 }
 0x4b6   :  { %v1293_v63 = vpop.f32.mrf.mxu0 }
 0x4b7   :  { %1327 = vmatmul.mubr.f32.vlgmr.msra.gmra.mxu1 %v809_v62  ;;  %v588_v36 = vadd.f32 %v587_v12, %v583_v3 }
 0x4b9   :  { %v594_v13 = vmul.f32 %v1575_v2, %v588_v36 }
 0x4bb   :  { %v891_v15 = vsel %vm885_vm7, %v594_v13, 0.0 }
 0x577   :  { %v876_v7 = vpop.f32.mrf.mxu1 }
 0x578   :  { %v880_v8 = vmul.f32 %v876_v7, %v1580_v4  ;;  %v886_v50 = vsel %vm885_vm7, %v876_v7, 0.0 }
 0x579   :  { %v1328_v9 = vpop.f32.mrf.mxu1  ;;  %v887_v10 = vmul.f32 %v886_v50, %v886_v50 }
 0x57a   :  { %881 = vadd.xlane.f32.xlu1 %v880_v8 }
 0x57b   :  { %888 = vadd.xlane.f32.xlu0 %v887_v10 }
 0x603   :  { %v882_v4 = vpop.xlane.xlu1 %881 }
 0x604   :  { %v889_v14 = vpop.xlane.xlu0 %888  ;;  %v893_v17 = vsel %vm892_vm8, %v882_v4, %v891_v15 }
 0x605   :  { %v890_v16 = vmul.f32 0.25, %v889_v14 }
 0x607   :  { %v895_v38 = vsel %vm894_vm9, %v890_v16, %v893_v17 }
 0x608   :  { %896 = vst [vmem:[#allocation7] sm:$0xff] %v895_v38 }
 0x609   :  { %1407 = shalt.err (!%p1404_p0)
}
 0x60a   :  { %906 = dma.vmem_to_hbm [thread:$0]  %s904_s18, 128, %s1693_s6, [#allocation4]  }
 0x60b   :  { %1420 = dma.done.wait [#allocation4], 128  }
 0x60c   :  { %1421 = vsyncadd [#allocation4], 4294967168 }
 0x60d   :  { %910 = vsyncpa [#allocation3], 1 }
 0x60e   :  { %911 = vsyncpa [#allocation6], 1 }
 0x60f   :  { %912 = vsyncpa [#allocation4], 1 }

</bundles_post_ra>
